<compile_context>
chip_gen: v7x
topology: tpu7x:2x2x1
jax: 0.10.0
libtpu: 0.0.40
codegen_flags: <defaults>
</compile_context>

<pallas_src>
import jax
import jax.numpy as jnp
from jax.experimental import pallas as pl
from jax.experimental.pallas import tpu as pltpu

BN_EPS = 1e-5  # PyTorch BatchNorm1d default


# -----------------------------------------------------------------------------
# Pallas kernel: one grid step per GNN branch.
# Layouts inside the kernel:
#   "flat"  : (B*N, F)  rows ordered (batch, node)      -> weight matmuls
#   "nodes" : (N, B*F)  cols ordered (batch, feature)   -> adjacency matmul / BN / min
# -----------------------------------------------------------------------------
def _gnntep_branch_kernel(x_ref, adj_ref, w1_ref, b1_ref, g1_ref, be1_ref,
                          w2_ref, b2_ref, g2_ref, be2_ref, wfc_ref, out_ref):
    f32, bf16 = jnp.float32, jnp.bfloat16
    NB = x_ref.shape[0]                   # B * N
    N = adj_ref.shape[-1]
    B = NB // N
    H = w1_ref.shape[-1]
    Bp = out_ref.shape[1]                 # sublane-padded batch rows of the output

    def flat_to_nodes(a):
        # (B*N, F) rows (batch, node) -> (N, B*F) cols (batch, feature)
        return jnp.concatenate([a[b * N:(b + 1) * N, :] for b in range(B)], axis=1)

    def nodes_to_flat(a):
        # (N, B*H) cols (batch, feature) -> (B*N, H) rows (batch, node)
        return jnp.concatenate([a[:, b * H:(b + 1) * H] for b in range(B)], axis=0)

    def batchnorm(h, gamma, beta):
        # BatchNorm1d(nnodes), training-mode stats: per node over (batch, feature).
        # Affine folded into two per-node scalars -> single FMA-shaped VPU pass.
        m = jnp.mean(h, axis=1, keepdims=True)              # (N, 1)
        c = h - m
        v = jnp.mean(c * c, axis=1, keepdims=True)          # biased variance, (N, 1)
        s = gamma * jax.lax.rsqrt(v + BN_EPS)
        t = beta - m * s
        return h * s + t

    adj = adj_ref[0]                                        # (N, N), bf16

    # --- conv1: real (un-kron'd) weights on the flat layout, then aggregate.
    xw = jnp.dot(x_ref[...], w1_ref[0], preferred_element_type=f32)      # (B*N, H) f32
    h = jnp.dot(adj, flat_to_nodes(xw).astype(bf16),
                preferred_element_type=f32) + b1_ref[0]                  # (N, B*H) f32
    h = jnp.maximum(h, 0.0)
    h = batchnorm(h, g1_ref[0], be1_ref[0])
    skip = jnp.min(h, axis=0, keepdims=True)                             # (1, B*H)

    # --- conv2.
    hw = jnp.dot(nodes_to_flat(h).astype(bf16), w2_ref[0],
                 preferred_element_type=f32)                             # (B*N, H) f32
    h = jnp.dot(adj, flat_to_nodes(hw).astype(bf16),
                preferred_element_type=f32) + b2_ref[0]                  # (N, B*H) f32
    h = jnp.maximum(h, 0.0)
    h = batchnorm(h, g2_ref[0], be2_ref[0])
    hmin = jnp.min(h, axis=0, keepdims=True) + skip                      # (1, B*H)

    # --- per-branch fc partial: rearrange (batch, feature) columns into (Bp, H)
    #     rows and do ONE lane/sublane-dense matmul + full-tile store.
    rows = [hmin[:, b * H:(b + 1) * H] for b in range(B)]
    if Bp > B:
        rows.append(jnp.zeros((Bp - B, H), f32))
    hB = jnp.concatenate(rows, axis=0)                                   # (Bp, H)
    out_ref[0] = jnp.dot(hB.astype(bf16), wfc_ref[0], preferred_element_type=f32)


# -----------------------------------------------------------------------------
# Glue: graph structure learning (Graph_ReLu_W) + parameter packing + call.
# -----------------------------------------------------------------------------
def graph_relu_w(A, k):
    """adj = ReLU(A); keep top-k per row; zero the diagonal (the * self.z)."""
    n = A.shape[0]
    adj = jnp.maximum(A, 0.0)
    _, idxs = jax.lax.top_k(adj, k)
    mask = jnp.zeros_like(adj).at[jnp.arange(n)[:, None], idxs].set(1.0)
    z = jnp.ones((n, n), jnp.float32) - jnp.eye(n, dtype=jnp.float32)
    return adj * mask * z


def gnntep_forward(x, params, k):
    """x: (B, N, W) float32.  Returns ((B, out_channels), adj_all)."""
    ngnn, N, _ = params["A"].shape
    B, _, W = x.shape
    H = params["w1"].shape[-1]
    C = params["bfc"].shape[-1]
    Bp = max(8, ((B + 7) // 8) * 8)          # sublane-pad batch rows of the fc partials
    Cp = max(128, ((C + 127) // 128) * 128)  # lane-pad out_channels
    f32, bf16 = jnp.float32, jnp.bfloat16

    # Graph structure learning (tiny data-dependent top-k scatter) stays in JAX glue.
    # TODO(synk): per-row top-k scatter could move in-kernel via scalar-prefetched
    # indices; kept outside since it is a data-dependent (N,N) scatter.
    adj_all = jax.vmap(lambda a: graph_relu_w(a, k))(params["A"])        # (ngnn, N, N) f32

    # bf16 MXU operands (accumulation stays f32 inside the kernel).
    x2 = x.reshape(B * N, W).astype(bf16)           # rows ordered (batch, node)
    adj_b = adj_all.astype(bf16)
    w1 = params["w1"].astype(bf16)                  # (ngnn, W, H) -- real weights, no kron
    w2 = params["w2"].astype(bf16)                  # (ngnn, H, H)

    # Biases tiled to the (batch, feature) column layout, f32: (ngnn, 1, B*H).
    b1t = jnp.tile(params["b1"], (1, B))[:, None, :].astype(f32)
    b2t = jnp.tile(params["b2"], (1, B))[:, None, :].astype(f32)
    # Per-node BatchNorm affine params as (ngnn, N, 1) columns, f32.
    g1, be1 = params["g1"][:, :, None], params["be1"][:, :, None]
    g2, be2 = params["g2"][:, :, None], params["be2"][:, :, None]

    # fc weight split per branch and lane-padded: (C, ngnn*H) -> (ngnn, H, Cp), bf16.
    wfc_t = params["wfc"].T.reshape(ngnn, H, C)
    wfc_p = jnp.zeros((ngnn, H, Cp), f32).at[:, :, :C].set(wfc_t).astype(bf16)

    branch = lambda g: (g, 0, 0)
    partials = pl.pallas_call(
        _gnntep_branch_kernel,
        out_shape=jax.ShapeDtypeStruct((ngnn, Bp, Cp), f32),
        grid=(ngnn,),
        in_specs=[
            pl.BlockSpec((B * N, W), lambda g: (0, 0)),    # x (shared by all branches)
            pl.BlockSpec((1, N, N), branch),               # adj_i
            pl.BlockSpec((1, W, H), branch),               # w1_i
            pl.BlockSpec((1, 1, B * H), branch),           # b1_i (tiled over batch)
            pl.BlockSpec((1, N, 1), branch),               # bn1 gamma
            pl.BlockSpec((1, N, 1), branch),               # bn1 beta
            pl.BlockSpec((1, H, H), branch),               # w2_i
            pl.BlockSpec((1, 1, B * H), branch),           # b2_i
            pl.BlockSpec((1, N, 1), branch),               # bn2 gamma
            pl.BlockSpec((1, N, 1), branch),               # bn2 beta
            pl.BlockSpec((1, H, Cp), branch),              # fc weight slice for branch i
        ],
        out_specs=pl.BlockSpec((1, Bp, Cp), branch),
        compiler_params=pltpu.CompilerParams(
            dimension_semantics=("parallel",),             # v7x: one branch per TensorCore
            vmem_limit_bytes=32 * 1024 * 1024),
    )(x2, adj_b, w1, b1t, g1, be1, w2, b2t, g2, be2, wfc_p)

    out = jnp.sum(partials, axis=0)[:B, :C] + params["bfc"]
    return out, adj_all


# -----------------------------------------------------------------------------
# Pure-JAX reference (mirrors the PyTorch forward).  With mxu_bf16=True, matmul
# operands are rounded to bf16 at exactly the points the kernel feeds the MXU,
# so the kernel can be checked tightly (only accumulation-order noise remains).
# -----------------------------------------------------------------------------
def reference_forward(x, adj_all, params, mxu_bf16=False):
    f32 = jnp.float32
    hp = jax.lax.Precision.HIGHEST
    cast = (lambda a: a.astype(jnp.bfloat16).astype(f32)) if mxu_bf16 else (lambda a: a)

    def bn(h, g, b):
        m = jnp.mean(h, axis=(0, 2), keepdims=True)
        v = jnp.mean((h - m) ** 2, axis=(0, 2), keepdims=True)
        s = g[None, :, None] * jax.lax.rsqrt(v + BN_EPS)
        t = b[None, :, None] - m * s
        return h * s + t

    hs = []
    for i in range(adj_all.shape[0]):
        adj = cast(adj_all[i])
        xw = jnp.einsum("bnw,wh->bnh", cast(x), cast(params["w1"][i]), precision=hp)
        h = jnp.einsum("mn,bnh->bmh", adj, cast(xw), precision=hp) + params["b1"][i]
        h = jax.nn.relu(h)
        h = bn(h, params["g1"][i], params["be1"][i])
        skip = jnp.min(h, axis=1)
        hw = jnp.einsum("bnh,hk->bnk", cast(h), cast(params["w2"][i]), precision=hp)
        h = jnp.einsum("mn,bnh->bmh", adj, cast(hw), precision=hp) + params["b2"][i]
        h = jax.nn.relu(h)
        h = bn(h, params["g2"][i], params["be2"][i])
        hs.append(jnp.min(h, axis=1) + skip)
    hcat = jnp.concatenate(hs, axis=1)
    return jnp.einsum("bf,cf->bc", cast(hcat), cast(params["wfc"]), precision=hp) + params["bfc"]


if __name__ == "__main__":
    # Small, tile-friendly config consistent with the module's forward.
    nnodes, window_size, ngnn, nhidden = 8, 8, 2, 32
    k, out_channels, batch = 4, 4, 2

    key = jax.random.PRNGKey(0)
    ks = jax.random.split(key, 12)
    f32 = jnp.float32

    params = {
        "A":   jax.random.normal(ks[0], (ngnn, nnodes, nnodes), f32),           # Graph_ReLu_W
        "w1":  jax.random.normal(ks[1], (ngnn, window_size, nhidden), f32) / jnp.sqrt(window_size),
        "b1":  0.1 * jax.random.normal(ks[2], (ngnn, nhidden), f32),
        "g1":  1.0 + 0.1 * jax.random.normal(ks[3], (ngnn, nnodes), f32),        # bnorm1 gamma
        "be1": 0.1 * jax.random.normal(ks[4], (ngnn, nnodes), f32),              # bnorm1 beta
        "w2":  jax.random.normal(ks[5], (ngnn, nhidden, nhidden), f32) / jnp.sqrt(nhidden),
        "b2":  0.1 * jax.random.normal(ks[6], (ngnn, nhidden), f32),
        "g2":  1.0 + 0.1 * jax.random.normal(ks[7], (ngnn, nnodes), f32),
        "be2": 0.1 * jax.random.normal(ks[8], (ngnn, nnodes), f32),
        "wfc": jax.random.normal(ks[9], (out_channels, ngnn * nhidden), f32) / jnp.sqrt(ngnn * nhidden),
        "bfc": 0.1 * jax.random.normal(ks[10], (out_channels,), f32),
    }

    # X: (batch, nnodes, window_size)
    x = jax.random.normal(ks[11], (batch, nnodes, window_size), f32)

    out, adj_all = gnntep_forward(x, params, k)
    out = jax.block_until_ready(out)
    assert out.shape == (batch, out_channels)

    # Tight check: reference with bf16 rounding at exactly the kernel's MXU inputs.
    ref_bf16 = jax.block_until_ready(reference_forward(x, adj_all, params, mxu_bf16=True))
    assert jnp.allclose(out, ref_bf16, rtol=2e-3, atol=2e-3), (out, ref_bf16)

    # Loose check vs. the pure-f32 reference (mirrors PyTorch): budget for the
    # deliberate bf16 MXU-input casts (~2^-8 relative per operand, amplified
    # through two aggregation + BatchNorm stages).
    ref_f32 = jax.block_until_ready(reference_forward(x, adj_all, params))
    assert jnp.allclose(out, ref_f32, rtol=5e-2, atol=1e-1), (out, ref_f32)

    print("KERNEL_OK")
</pallas_src>

<mosaic_0001>
module attributes {stable_mosaic.version = 11 : i64} {
  func.func @_gnntep_branch_kernel(%arg0: i32, %arg1: memref<16x8xbf16, #tpu.memory_space<vmem>>, %arg2: memref<1x8x8xbf16, #tpu.memory_space<vmem>>, %arg3: memref<1x8x32xbf16, #tpu.memory_space<vmem>>, %arg4: memref<1x1x64xf32, #tpu.memory_space<vmem>>, %arg5: memref<1x8x1xf32, #tpu.memory_space<vmem>>, %arg6: memref<1x8x1xf32, #tpu.memory_space<vmem>>, %arg7: memref<1x32x32xbf16, #tpu.memory_space<vmem>>, %arg8: memref<1x1x64xf32, #tpu.memory_space<vmem>>, %arg9: memref<1x8x1xf32, #tpu.memory_space<vmem>>, %arg10: memref<1x8x1xf32, #tpu.memory_space<vmem>>, %arg11: memref<1x32x128xbf16, #tpu.memory_space<vmem>>, %arg12: memref<1x8x128xf32, #tpu.memory_space<vmem>>) attributes {dimension_semantics = [#tpu.dimension_semantics<parallel>], iteration_bounds = array<i64: 2>, scalar_prefetch = 0 : i64, scratch_operands = 0 : i64, tpu.core_type = #tpu.core_type<tc>, window_params = [{pipeline_mode = #tpu.pipeline_mode<synchronous>, transform_indices = @transform_0, window_bounds = array<i64: 16, 8>}, {transform_indices = @transform_1, window_bounds = array<i64: 1, 8, 8>}, {transform_indices = @transform_2, window_bounds = array<i64: 1, 8, 32>}, {transform_indices = @transform_3, window_bounds = array<i64: 1, 1, 64>}, {transform_indices = @transform_4, window_bounds = array<i64: 1, 8, 1>}, {transform_indices = @transform_5, window_bounds = array<i64: 1, 8, 1>}, {transform_indices = @transform_6, window_bounds = array<i64: 1, 32, 32>}, {transform_indices = @transform_7, window_bounds = array<i64: 1, 1, 64>}, {transform_indices = @transform_8, window_bounds = array<i64: 1, 8, 1>}, {transform_indices = @transform_9, window_bounds = array<i64: 1, 8, 1>}, {transform_indices = @transform_10, window_bounds = array<i64: 1, 32, 128>}, {transform_indices = @transform_11, window_bounds = array<i64: 1, 8, 128>}]} {
    %c0 = arith.constant 0 : index
    %c0_0 = arith.constant 0 : index
    %c0_1 = arith.constant 0 : index
    %0 = vector.load %arg2[%c0, %c0_0, %c0_1] : memref<1x8x8xbf16, #tpu.memory_space<vmem>>, vector<1x8x8xbf16>
    %1 = vector.shape_cast %0 : vector<1x8x8xbf16> to vector<8x8xbf16>
    %c0_2 = arith.constant 0 : index
    %c0_3 = arith.constant 0 : index
    %2 = vector.load %arg1[%c0_2, %c0_3] : memref<16x8xbf16, #tpu.memory_space<vmem>>, vector<16x8xbf16>
    %c0_4 = arith.constant 0 : index
    %c0_5 = arith.constant 0 : index
    %c0_6 = arith.constant 0 : index
    %3 = vector.load %arg3[%c0_4, %c0_5, %c0_6] : memref<1x8x32xbf16, #tpu.memory_space<vmem>>, vector<1x8x32xbf16>
    %4 = vector.shape_cast %3 : vector<1x8x32xbf16> to vector<8x32xbf16>
    %cst = arith.constant dense<0.000000e+00> : vector<16x32xf32>
    %5 = tpu.matmul %2, %4, %cst {dimension_numbers = #tpu.dot_dimension_numbers<[1], [0], [0], [1], [0, 0, 1, 1], [], []>} : vector<16x8xbf16>, vector<8x32xbf16>, vector<16x32xf32> -> vector<16x32xf32>
    %6 = vector.extract_strided_slice %5 {offsets = [0, 0], sizes = [8, 32], strides = [1, 1]} : vector<16x32xf32> to vector<8x32xf32>
    %7 = vector.extract_strided_slice %5 {offsets = [8, 0], sizes = [8, 32], strides = [1, 1]} : vector<16x32xf32> to vector<8x32xf32>
    %8 = tpu.concatenate %6, %7 in 1 : vector<8x32xf32>, vector<8x32xf32> -> vector<8x64xf32>
    %9 = arith.truncf %8 : vector<8x64xf32> to vector<8x64xbf16>
    %cst_7 = arith.constant dense<0.000000e+00> : vector<8x64xf32>
    %10 = tpu.matmul %1, %9, %cst_7 {dimension_numbers = #tpu.dot_dimension_numbers<[1], [0], [0], [1], [0, 0, 1, 1], [], []>} : vector<8x8xbf16>, vector<8x64xbf16>, vector<8x64xf32> -> vector<8x64xf32>
    %c0_8 = arith.constant 0 : index
    %c0_9 = arith.constant 0 : index
    %c0_10 = arith.constant 0 : index
    %11 = vector.load %arg4[%c0_8, %c0_9, %c0_10] : memref<1x1x64xf32, #tpu.memory_space<vmem>>, vector<1x1x64xf32>
    %12 = vector.shape_cast %11 : vector<1x1x64xf32> to vector<1x64xf32>
    %13 = vector.broadcast %12 : vector<1x64xf32> to vector<8x64xf32>
    %14 = arith.addf %10, %13 : vector<8x64xf32>
    %cst_11 = arith.constant 0.000000e+00 : f32
    %15 = vector.broadcast %cst_11 : f32 to vector<8x64xf32>
    %16 = arith.maximumf %14, %15 : vector<8x64xf32>
    %c0_12 = arith.constant 0 : index
    %c0_13 = arith.constant 0 : index
    %c0_14 = arith.constant 0 : index
    %17 = vector.load %arg5[%c0_12, %c0_13, %c0_14] : memref<1x8x1xf32, #tpu.memory_space<vmem>>, vector<1x8x1xf32>
    %18 = vector.shape_cast %17 : vector<1x8x1xf32> to vector<8x1xf32>
    %c0_15 = arith.constant 0 : index
    %c0_16 = arith.constant 0 : index
    %c0_17 = arith.constant 0 : index
    %19 = vector.load %arg6[%c0_15, %c0_16, %c0_17] : memref<1x8x1xf32, #tpu.memory_space<vmem>>, vector<1x8x1xf32>
    %20 = vector.shape_cast %19 : vector<1x8x1xf32> to vector<8x1xf32>
    %cst_18 = arith.constant dense<0.000000e+00> : vector<8xf32>
    %21 = vector.multi_reduction <add>, %16, %cst_18 [1] : vector<8x64xf32> to vector<8xf32>
    %22 = vector.shape_cast %21 : vector<8xf32> to vector<8x1xf32>
    %cst_19 = arith.constant 6.400000e+01 : f32
    %23 = vector.broadcast %cst_19 : f32 to vector<8x1xf32>
    %24 = arith.divf %22, %23 : vector<8x1xf32>
    %25 = vector.broadcast %24 : vector<8x1xf32> to vector<8x64xf32>
    %26 = arith.subf %16, %25 : vector<8x64xf32>
    %27 = arith.mulf %26, %26 : vector<8x64xf32>
    %cst_20 = arith.constant dense<0.000000e+00> : vector<8xf32>
    %28 = vector.multi_reduction <add>, %27, %cst_20 [1] : vector<8x64xf32> to vector<8xf32>
    %29 = vector.shape_cast %28 : vector<8xf32> to vector<8x1xf32>
    %cst_21 = arith.constant 6.400000e+01 : f32
    %30 = vector.broadcast %cst_21 : f32 to vector<8x1xf32>
    %31 = arith.divf %29, %30 : vector<8x1xf32>
    %cst_22 = arith.constant 9.99999974E-6 : f32
    %32 = vector.broadcast %cst_22 : f32 to vector<8x1xf32>
    %33 = arith.addf %31, %32 : vector<8x1xf32>
    %34 = math.rsqrt %33 : vector<8x1xf32>
    %35 = arith.mulf %18, %34 : vector<8x1xf32>
    %36 = arith.mulf %24, %35 : vector<8x1xf32>
    %37 = arith.subf %20, %36 : vector<8x1xf32>
    %38 = vector.broadcast %35 : vector<8x1xf32> to vector<8x64xf32>
    %39 = arith.mulf %16, %38 : vector<8x64xf32>
    %40 = vector.broadcast %37 : vector<8x1xf32> to vector<8x64xf32>
    %41 = arith.addf %39, %40 : vector<8x64xf32>
    %cst_23 = arith.constant dense<0x7F800000> : vector<64xf32>
    %42 = vector.multi_reduction <minimumf>, %41, %cst_23 [0] : vector<8x64xf32> to vector<64xf32>
    %43 = vector.shape_cast %42 : vector<64xf32> to vector<1x64xf32>
    %44 = vector.extract_strided_slice %41 {offsets = [0, 0], sizes = [8, 32], strides = [1, 1]} : vector<8x64xf32> to vector<8x32xf32>
    %45 = vector.extract_strided_slice %41 {offsets = [0, 32], sizes = [8, 32], strides = [1, 1]} : vector<8x64xf32> to vector<8x32xf32>
    %46 = tpu.concatenate %44, %45 in 0 : vector<8x32xf32>, vector<8x32xf32> -> vector<16x32xf32>
    %47 = arith.truncf %46 : vector<16x32xf32> to vector<16x32xbf16>
    %c0_24 = arith.constant 0 : index
    %c0_25 = arith.constant 0 : index
    %c0_26 = arith.constant 0 : index
    %48 = vector.load %arg7[%c0_24, %c0_25, %c0_26] : memref<1x32x32xbf16, #tpu.memory_space<vmem>>, vector<1x32x32xbf16>
    %49 = vector.shape_cast %48 : vector<1x32x32xbf16> to vector<32x32xbf16>
    %cst_27 = arith.constant dense<0.000000e+00> : vector<16x32xf32>
    %50 = tpu.matmul %47, %49, %cst_27 {dimension_numbers = #tpu.dot_dimension_numbers<[1], [0], [0], [1], [0, 0, 1, 1], [], []>} : vector<16x32xbf16>, vector<32x32xbf16>, vector<16x32xf32> -> vector<16x32xf32>
    %51 = vector.extract_strided_slice %50 {offsets = [0, 0], sizes = [8, 32], strides = [1, 1]} : vector<16x32xf32> to vector<8x32xf32>
    %52 = vector.extract_strided_slice %50 {offsets = [8, 0], sizes = [8, 32], strides = [1, 1]} : vector<16x32xf32> to vector<8x32xf32>
    %53 = tpu.concatenate %51, %52 in 1 : vector<8x32xf32>, vector<8x32xf32> -> vector<8x64xf32>
    %54 = arith.truncf %53 : vector<8x64xf32> to vector<8x64xbf16>
    %cst_28 = arith.constant dense<0.000000e+00> : vector<8x64xf32>
    %55 = tpu.matmul %1, %54, %cst_28 {dimension_numbers = #tpu.dot_dimension_numbers<[1], [0], [0], [1], [0, 0, 1, 1], [], []>} : vector<8x8xbf16>, vector<8x64xbf16>, vector<8x64xf32> -> vector<8x64xf32>
    %c0_29 = arith.constant 0 : index
    %c0_30 = arith.constant 0 : index
    %c0_31 = arith.constant 0 : index
    %56 = vector.load %arg8[%c0_29, %c0_30, %c0_31] : memref<1x1x64xf32, #tpu.memory_space<vmem>>, vector<1x1x64xf32>
    %57 = vector.shape_cast %56 : vector<1x1x64xf32> to vector<1x64xf32>
    %58 = vector.broadcast %57 : vector<1x64xf32> to vector<8x64xf32>
    %59 = arith.addf %55, %58 : vector<8x64xf32>
    %cst_32 = arith.constant 0.000000e+00 : f32
    %60 = vector.broadcast %cst_32 : f32 to vector<8x64xf32>
    %61 = arith.maximumf %59, %60 : vector<8x64xf32>
    %c0_33 = arith.constant 0 : index
    %c0_34 = arith.constant 0 : index
    %c0_35 = arith.constant 0 : index
    %62 = vector.load %arg9[%c0_33, %c0_34, %c0_35] : memref<1x8x1xf32, #tpu.memory_space<vmem>>, vector<1x8x1xf32>
    %63 = vector.shape_cast %62 : vector<1x8x1xf32> to vector<8x1xf32>
    %c0_36 = arith.constant 0 : index
    %c0_37 = arith.constant 0 : index
    %c0_38 = arith.constant 0 : index
    %64 = vector.load %arg10[%c0_36, %c0_37, %c0_38] : memref<1x8x1xf32, #tpu.memory_space<vmem>>, vector<1x8x1xf32>
    %65 = vector.shape_cast %64 : vector<1x8x1xf32> to vector<8x1xf32>
    %cst_39 = arith.constant dense<0.000000e+00> : vector<8xf32>
    %66 = vector.multi_reduction <add>, %61, %cst_39 [1] : vector<8x64xf32> to vector<8xf32>
    %67 = vector.shape_cast %66 : vector<8xf32> to vector<8x1xf32>
    %cst_40 = arith.constant 6.400000e+01 : f32
    %68 = vector.broadcast %cst_40 : f32 to vector<8x1xf32>
    %69 = arith.divf %67, %68 : vector<8x1xf32>
    %70 = vector.broadcast %69 : vector<8x1xf32> to vector<8x64xf32>
    %71 = arith.subf %61, %70 : vector<8x64xf32>
    %72 = arith.mulf %71, %71 : vector<8x64xf32>
    %cst_41 = arith.constant dense<0.000000e+00> : vector<8xf32>
    %73 = vector.multi_reduction <add>, %72, %cst_41 [1] : vector<8x64xf32> to vector<8xf32>
    %74 = vector.shape_cast %73 : vector<8xf32> to vector<8x1xf32>
    %cst_42 = arith.constant 6.400000e+01 : f32
    %75 = vector.broadcast %cst_42 : f32 to vector<8x1xf32>
    %76 = arith.divf %74, %75 : vector<8x1xf32>
    %cst_43 = arith.constant 9.99999974E-6 : f32
    %77 = vector.broadcast %cst_43 : f32 to vector<8x1xf32>
    %78 = arith.addf %76, %77 : vector<8x1xf32>
    %79 = math.rsqrt %78 : vector<8x1xf32>
    %80 = arith.mulf %63, %79 : vector<8x1xf32>
    %81 = arith.mulf %69, %80 : vector<8x1xf32>
    %82 = arith.subf %65, %81 : vector<8x1xf32>
    %83 = vector.broadcast %80 : vector<8x1xf32> to vector<8x64xf32>
    %84 = arith.mulf %61, %83 : vector<8x64xf32>
    %85 = vector.broadcast %82 : vector<8x1xf32> to vector<8x64xf32>
    %86 = arith.addf %84, %85 : vector<8x64xf32>
    %cst_44 = arith.constant dense<0x7F800000> : vector<64xf32>
    %87 = vector.multi_reduction <minimumf>, %86, %cst_44 [0] : vector<8x64xf32> to vector<64xf32>
    %88 = vector.shape_cast %87 : vector<64xf32> to vector<1x64xf32>
    %89 = arith.addf %88, %43 : vector<1x64xf32>
    %90 = vector.extract_strided_slice %89 {offsets = [0, 0], sizes = [1, 32], strides = [1, 1]} : vector<1x64xf32> to vector<1x32xf32>
    %91 = vector.extract_strided_slice %89 {offsets = [0, 32], sizes = [1, 32], strides = [1, 1]} : vector<1x64xf32> to vector<1x32xf32>
    %cst_45 = arith.constant 0.000000e+00 : f32
    %92 = vector.broadcast %cst_45 : f32 to vector<6x32xf32>
    %93 = tpu.concatenate %90, %91, %92 in 0 : vector<1x32xf32>, vector<1x32xf32>, vector<6x32xf32> -> vector<8x32xf32>
    %94 = arith.truncf %93 : vector<8x32xf32> to vector<8x32xbf16>
    %c0_46 = arith.constant 0 : index
    %c0_47 = arith.constant 0 : index
    %c0_48 = arith.constant 0 : index
    %95 = vector.load %arg11[%c0_46, %c0_47, %c0_48] : memref<1x32x128xbf16, #tpu.memory_space<vmem>>, vector<1x32x128xbf16>
    %96 = vector.shape_cast %95 : vector<1x32x128xbf16> to vector<32x128xbf16>
    %cst_49 = arith.constant dense<0.000000e+00> : vector<8x128xf32>
    %97 = tpu.matmul %94, %96, %cst_49 {dimension_numbers = #tpu.dot_dimension_numbers<[1], [0], [0], [1], [0, 0, 1, 1], [], []>} : vector<8x32xbf16>, vector<32x128xbf16>, vector<8x128xf32> -> vector<8x128xf32>
    %c0_50 = arith.constant 0 : index
    %c0_51 = arith.constant 0 : index
    %c0_52 = arith.constant 0 : index
    %98 = vector.load %arg12[%c0_50, %c0_51, %c0_52] : memref<1x8x128xf32, #tpu.memory_space<vmem>>, vector<1x8x128xf32>
    %99 = vector.shape_cast %98 : vector<1x8x128xf32> to vector<8x128xf32>
    %100 = vector.shape_cast %97 : vector<8x128xf32> to vector<1x8x128xf32>
    tpu.vector_store %arg12[%c0_50, %c0_51, %c0_52], %100 {strides = array<i32>} : memref<1x8x128xf32, #tpu.memory_space<vmem>>, vector<1x8x128xf32>,
    return
  }
  func.func @transform_0(%arg0: i32) -> (i32, i32) {
    %c0_i32 = arith.constant 0 : i32
    %c0_i32_0 = arith.constant 0 : i32
    %c0_i32_1 = arith.constant 0 : i32
    return %c0_i32, %c0_i32_0 : i32, i32
  }
  func.func @transform_1(%arg0: i32) -> (i32, i32, i32) {
    %c0_i32 = arith.constant 0 : i32
    %c0_i32_0 = arith.constant 0 : i32
    %c0_i32_1 = arith.constant 0 : i32
    return %arg0, %c0_i32, %c0_i32_0 : i32, i32, i32
  }
  func.func @transform_2(%arg0: i32) -> (i32, i32, i32) {
    %c0_i32 = arith.constant 0 : i32
    %c0_i32_0 = arith.constant 0 : i32
    %c0_i32_1 = arith.constant 0 : i32
    return %arg0, %c0_i32, %c0_i32_0 : i32, i32, i32
  }
  func.func @transform_3(%arg0: i32) -> (i32, i32, i32) {
    %c0_i32 = arith.constant 0 : i32
    %c0_i32_0 = arith.constant 0 : i32
    %c0_i32_1 = arith.constant 0 : i32
    return %arg0, %c0_i32, %c0_i32_0 : i32, i32, i32
  }
  func.func @transform_4(%arg0: i32) -> (i32, i32, i32) {
    %c0_i32 = arith.constant 0 : i32
    %c0_i32_0 = arith.constant 0 : i32
    %c0_i32_1 = arith.constant 0 : i32
    return %arg0, %c0_i32, %c0_i32_0 : i32, i32, i32
  }
  func.func @transform_5(%arg0: i32) -> (i32, i32, i32) {
    %c0_i32 = arith.constant 0 : i32
    %c0_i32_0 = arith.constant 0 : i32
    %c0_i32_1 = arith.constant 0 : i32
    return %arg0, %c0_i32, %c0_i32_0 : i32, i32, i32
  }
  func.func @transform_6(%arg0: i32) -> (i32, i32, i32) {
    %c0_i32 = arith.constant 0 : i32
    %c0_i32_0 = arith.constant 0 : i32
    %c0_i32_1 = arith.constant 0 : i32
    return %arg0, %c0_i32, %c0_i32_0 : i32, i32, i32
  }
  func.func @transform_7(%arg0: i32) -> (i32, i32, i32) {
    %c0_i32 = arith.constant 0 : i32
    %c0_i32_0 = arith.constant 0 : i32
    %c0_i32_1 = arith.constant 0 : i32
    return %arg0, %c0_i32, %c0_i32_0 : i32, i32, i32
  }
  func.func @transform_8(%arg0: i32) -> (i32, i32, i32) {
    %c0_i32 = arith.constant 0 : i32
    %c0_i32_0 = arith.constant 0 : i32
    %c0_i32_1 = arith.constant 0 : i32
    return %arg0, %c0_i32, %c0_i32_0 : i32, i32, i32
  }
  func.func @transform_9(%arg0: i32) -> (i32, i32, i32) {
    %c0_i32 = arith.constant 0 : i32
    %c0_i32_0 = arith.constant 0 : i32
    %c0_i32_1 = arith.constant 0 : i32
    return %arg0, %c0_i32, %c0_i32_0 : i32, i32, i32
  }
  func.func @transform_10(%arg0: i32) -> (i32, i32, i32) {
    %c0_i32 = arith.constant 0 : i32
    %c0_i32_0 = arith.constant 0 : i32
    %c0_i32_1 = arith.constant 0 : i32
    return %arg0, %c0_i32, %c0_i32_0 : i32, i32, i32
  }
  func.func @transform_11(%arg0: i32) -> (i32, i32, i32) {
    %c0_i32 = arith.constant 0 : i32
    %c0_i32_0 = arith.constant 0 : i32
    %c0_i32_1 = arith.constant 0 : i32
    return %arg0, %c0_i32, %c0_i32_0 : i32, i32, i32
  }
}

</mosaic_0001>

<bundles_post_ra>
// kernel: tpu_custom_call.1
= control target key start
LH: loop header
LB: loop body
LE: loop exit
PB: predicated region body
PF: predicated region fallthrough
CT: control target
= control target key end

     0   :  { %s1548_s0 = inlined_call_operand.vmem [shape: bf16[16,8], index: 0, kind: input, shape index: {}]   ;;  %s1549_s1 = inlined_call_operand.vmem [shape: bf16[2,8,8], index: 1, kind: input, shape index: {}]   ;;  %s1550_s2 = inlined_call_operand.vmem [shape: bf16[2,8,32], index: 2, kind: input, shape index: {}]   ;;  %s1551_s3 = inlined_call_operand.vmem [shape: f32[2,1,64], index: 3, kind: input, shape index: {}]   ;;  %s1552_s4 = inlined_call_operand.vmem [shape: f32[2,8,1], index: 4, kind: input, shape index: {}]   ;;  %s1553_s5 = inlined_call_operand.vmem [shape: f32[2,8,1], index: 5, kind: input, shape index: {}]   ;;  %s1554_s6 = inlined_call_operand.vmem [shape: bf16[2,32,32], index: 6, kind: input, shape index: {}]   ;;  %s1555_s7 = inlined_call_operand.vmem [shape: f32[2,1,64], index: 7, kind: input, shape index: {}]   ;;  %s1556_s8 = inlined_call_operand.vmem [shape: f32[2,8,1], index: 8, kind: input, shape index: {}]   ;;  %s1557_s9 = inlined_call_operand.vmem [shape: f32[2,8,1], index: 9, kind: input, shape index: {}]   ;;  %s1558_s10 = inlined_call_operand.vmem [shape: bf16[2,32,128], index: 10, kind: input, shape index: {}]   ;;  %s1559_s11 = inlined_call_operand.hbm [shape: f32[2,8,128], index: 11, kind: output, shape index: {}]  }
   0x1   :  { %1562 = sst [smem:[#allocation5_spill]] %s1548_s0 }
   0x2   :  { %1563 = sst [smem:[#allocation6_spill]] %s1549_s1 }
   0x3   :  { %16 = vsyncpa [#allocation3], 0 }
   0x4   :  { %18 = vsyncpa [#allocation3 + $0x1], 0  ;;  %s1360_s17 = smov 0   ;;  %s1362_s18 = smov 0  }
   0x5   :  { %s1364_s19 = smov 0   ;;  %s1366_s20 = smov 0  }
   0x6 LB: > { %s1381_s21 = sadd.s32 4294967295, %s1292_s20   ;;  %s1096_s22 = sadd.s32 4294967294, %s1292_s20   ;;  %s1292_s20 = sphi %s1366_s20, %s1573_s20   ;;  %s1288_s19 = sphi %s1364_s19, %s1572_s19   ;;  %s1284_s18 = sphi %s1362_s18, %s1571_s18   ;;  %s1280_s17 = sphi %s1360_s17, %s1570_s17  }
   0x7   : > { %s1385_s23 = sadd.s32 1, %s1292_s20   ;;  %s312_s24 = sadd.s32 1, %s1288_s19 }
   0x8   : > { %s309_s25 = ssub.s32 %s1292_s20, %s1385_s23  ;;  %p322_p0 = scmp.ne.s32.totalorder %s1288_s19, %s1284_s18 }
   0x9   : > { %p310_p1 = scmp.eq.s32.totalorder %s309_s25, 0  ;;  %p323_p2 = scmp.eq.s32.totalorder %s1381_s21, 1 }
   0xa   : > { %p328_p3 = scmp.ne.s32.totalorder %s1284_s18, %s1280_s17  ;;  %p329_p4 = scmp.eq.s32.totalorder %s1096_s22, 1 }
   0xb   : > { %s1396_s26 = scalar_select %p310_p1, %s1288_s19, %s312_s24  }
   0xc   : > { %p1398_p5 = por %p323_p2, %p322_p0  ;;  %p1402_p6 = por %p329_p4, %p328_p3 }
   0xd   : > { %p1099_p7 = scmp.ge.s32.totalorder %s1292_s20, 1  ;;  %p420_p8 = scmp.lt.s32.totalorder %s1292_s20, 3 }
   0xf   : > { %p421_p9 = pnand %p1099_p7, %p420_p8 }
  0x10   : > { %p495_p10 = scmp.lt.s32.totalorder (!%p421_p9), %s1381_s21, 1  ;;  %v1294_v0 = vmov (!%p421_p9), 0.0   ;;  %vm1295_vm0 = vmmov (!%p421_p9), 0   ;;  %vm549_vm1 = vcmask (!%p421_p9), 1043456   ;;  %s1566_s0 = sld [smem:[#allocation5_spill]] (!%p421_p9)  ;;  %vm545_vm2 = vcmask (!%p421_p9), 64512  }
  0x11   : > { %424 = sbr.rel (%p421_p9) target bundleno = 2501 (0x9c5), region = 64  ;;  %1141 = vmatprep.subr.bf16.mxu0 (!%p421_p9), %v1294_v0  ;;  %1143 = vmatprep.mubr.msk.bf16.mxu0 (!%p421_p9), %vm1295_vm0, %v1294_v0  ;;  %s1560_s22 = smov (!%p421_p9), 32   ;;  %vm598_vm3 = vcmask (!%p421_p9), 261120   ;;  %vm657_vm4 = vcmask (!%p421_p9), 523264   ;;  %v1297_v26 = vmov (!%p421_p9), 0   ;;  %vm856_vm5 = vcmask (!%p421_p9), 1040384  }
  0x12   : > { %1147 = vmatprep.subr.bf16.mxu1 (!%p421_p9), %v1294_v0  ;;  %1149 = vmatprep.mubr.msk.bf16.mxu1 (!%p421_p9), %vm1295_vm0, %v1294_v0  ;;  %s1567_s1 = sld [smem:[#allocation6_spill]] (!%p421_p9)  ;;  %s1561_s24 = smov (!%p421_p9), 96   ;;  %vm858_vm6 = vcmask (!%p421_p9), 1041408  }
  0x13   : > { %1219 = vset.pattern.permute.xlu1 (!%p421_p9), %v1297_v26  ;;  %1220 = vset.pattern.permute.xlu0 (!%p421_p9), %v1297_v26  ;;  %s1124_s13 = sshll.u32 (!%p421_p9), %s1381_s21, 7 }
  0x16   : > { %v1221_v3 = vld [vmem:[%s1566_s0] sm:$0xff] (!%p421_p9)   ;;  %s1568_s0 = smov (!%p421_p9), 32  }
  0x18   : > { %s1413_s29 = scalar_select %p495_p10, %s1381_s21, 1 }
  0x19   : > { %s1299_s21 = smov [#allocation2]  }
  0x1a   : > { %s1101_s30 = sshll.u32 %s1413_s29, 2  ;;  %s505_s15 = scalar_lea.vmem %s1551_s3, %s1413_s29 }
  0x1b   : > { %s502_s14 = scalar_lea.vmem %s1550_s2, %s1101_s30  ;;  %s498_s12 = scalar_lea.vmem %s1567_s1, %s1101_s30  ;;  %v1113_v13 = vld [vmem:[%s505_s15] ss:$0 sm:$0xff] }
  0x1c   : > { %v539_v1 = vld [vmem:[%s502_s14] sm:$0xf]  ;;  %s1450_s30 = sshll.u32 %s1413_s29, 3  ;;  %s1127_s15 = sshll.u32 %s1413_s29, 4 }
  0x1d   : > { %v551_v2 = vsel %vm549_vm1, %v539_v1, 0  ;;  %v1436_v12 = vld [vmem:[%s498_s12] sm:$0xf]  ;;  %s509_s25 = scalar_lea.vmem %s1552_s4, %s1450_s30  ;;  %s513_s14 = scalar_lea.vmem %s1553_s5, %s1450_s30 }
  0x1e   : > { %1142 = vmatpush3.bf16.msra.mxu0 %v551_v2  ;;  %v655_v30 = vld [vmem:[%s509_s25] sm:$0xff]  ;;  %s518_s16 = scalar_lea.vmem %s1554_s6, %s1127_s15  ;;  %s521_s12 = scalar_lea.vmem %s1555_s7, %s1413_s29 }
  0x1f   : > { %1153 = vmatprep.subr.bf16.mxu0 %v1294_v0  ;;  %v656_v33 = vld [vmem:[%s513_s14] sm:$0xff]  ;;  %v1223_v37 = vld [vmem:[%s518_s16 + $0x8] sm:$0xff]   ;;  %s529_s25 = scalar_lea.vmem %s1557_s9, %s1450_s30  ;;  %s534_s1 = scalar_lea.vmem %s1558_s10, %s1127_s15 }
  0x20   : > { %v1222_v36 = vld [vmem:[%s518_s16] sm:$0xff]   ;;  %s525_s16 = scalar_lea.vmem %s1556_s8, %s1450_s30  ;;  %s1569_s29 = smov 96  }
  0x21   : > { %1144 = vmatmul.mubr.msk.bf16.vlgmr.msra.gmra.mrb[0].mxu0 %vm545_vm2, %v1221_v3  ;;  %v1118_v52 = vld [vmem:[%s521_s12] ss:$0 sm:$0xff]  ;;  %s1234_s12 = sshll.u32 %s1299_s21, 4  ;;  %s1235_s12 = int_to_ptr.vmem [resolvable:$false] %s1234_s12 }
  0x22   : > { %1157 = vmatprep.mubr.msk.bf16.mxu0 %vm1295_vm0, %v1294_v0  ;;  %1154 = vmatpush3.bf16.msra.mxu0 %v1222_v36 }
  0x23   : > { %1155 = vmatprep.subr.bf16.mxu0 %v1294_v0 }
  0x26   : > { %1156 = vmatpush3.bf16.msra.mxu0 %v1223_v37 }
  0x27   : > { %1167 = vmatprep.subr.bf16.mxu0 %v1294_v0 }
  0xf4   : > { %v587_v4 = vpop.f32.mrb[0].mxu0 }
  0xf5   : > { %v1145_v5 = vpop.f32.mrb[1].mxu0 }
  0xf6   : > { %v590_v6 = vpop.f32.mrb[2].mxu0  ;;  %v815_v5 = vld [vmem:[%s525_s16] sm:$0xff] }
  0xf7   : > { %595 = vrot.lane.b32.xlu0 %v590_v6, %s1560_s22  ;;  %v1146_v7 = vpop.f32.mrb[3].mxu0 }
 0x169   : > { %v596_v8 = vpop.permute.xlu0 %595 }
 0x16a   : > { %v599_v9 = vsel %vm598_vm3, %v587_v4, %v596_v8  ;;  %v816_v8 = vld [vmem:[%s529_s25] sm:$0xff] }
 0x16b   : > { %v600_v10 = vpack.c.bf16 %v599_v9, %v599_v9 }
 0x16d   : > { %v612_v11 = vsel %vm549_vm1, %v600_v10, 0 }
 0x16e   : > { %1148 = vmatpush3.bf16.msra.mxu1 %v612_v11  ;;  %v1224_v11 = vld [vmem:[%s534_s1] sm:$0xff]  }
 0x16f   : > { %1161 = vmatprep.subr.bf16.mxu1 %v1294_v0 }
 0x171   : > { %1150 = vmatmul.mubr.msk.bf16.vlgmr.msra.gmra.mrb[0].mxu1 %vm545_vm2, %v1436_v12 }
 0x172   : > { %1163 = vmatprep.mubr.msk.bf16.mxu1 %vm1295_vm0, %v1294_v0 }
 0x244   : > { %v648_v14 = vpop.f32.mrb[0].mxu1 }
 0x245   : > { %v649_v15 = vadd.f32 %v1113_v13, %v648_v14  ;;  %v1151_v16 = vpop.f32.mrb[1].mxu1 }
 0x246   : > { %v651_v17 = vpop.f32.mrb[2].mxu1 }
 0x247   : > { %v654_v18 = vmax.f32 %v649_v15, 0.0  ;;  %v1152_v19 = vpop.f32.mrb[3].mxu1 }
 0x249   : > { %v658_v20 = vsel %vm657_vm4, %v654_v18, 0.0 }
 0x24a   : > { %659 = vadd.xlane.f32.xlu0 %v658_v20 }
 0x2d7   : > { %v660_v21 = vpop.xlane.xlu0 %659 }
 0x2d8   : > { %v662_v22 = vmul.f32 0.015625, %v660_v21 }
 0x2da   : > { %v663_v23 = vsub.f32 %v654_v18, %v662_v22 }
 0x2dc   : > { %v664_v24 = vmul.f32 %v663_v23, %v663_v23 }
 0x2de   : > { %v665_v25 = vsel %vm657_vm4, %v664_v24, 0.0 }
 0x2df   : > { %666 = vadd.xlane.f32.xlu1 %v665_v25 }
 0x36c   : > { %v667_v27 = vpop.xlane.xlu1 %666 }
 0x36d   : > { %v668_v28 = vmul.f32 0.015625, %v667_v27 }
 0x36f   : > { %v669_v29 = vadd.f32 1e-05, %v668_v28 }
 0x371   : > { %1226 = vrsqrt.f32 %v669_v29 }
 0x37b   : > { %v1227_v31 = vpop.eup %1226 }
 0x37c   : > { %v671_v32 = vmul.f32 %v1227_v31, %v655_v30 }
 0x37e   : > { %676 = vperm.xlu1 %1219, %v671_v32   ;;  %v672_v34 = vmul.f32 %v671_v32, %v662_v22  ;;  %v1225_v22 = vld [vmem:[%s534_s1 + $0x8] sm:$0xff]   ;;  %s492_s1 = sand.u32 1, %s1284_s18  }
 0x37f   : > { %s1100_s30 = sshll.u32 %s492_s1, 3  ;;  %s922_s22 = scalar_lea.sflag [#allocation3], %s492_s1 }
 0x380   : > { %v673_v35 = vsub.f32 %v656_v33, %v672_v34  ;;  %s494_s15 = scalar_lea.vmem [#allocation2], %s1100_s30 }
 0x382   : > { %682 = vperm.xlu1 %1219, %v673_v35  }
 0x3fd   : > { %v677_v38 = vpop.permute.xlu1 %676 }
 0x3fe   : > { %v679_v39 = vmul.f32 %v677_v38, %v654_v18 }
 0x401   : > { %v683_v40 = vpop.permute.xlu1 %682 }
 0x402   : > { %v685_v41 = vadd.f32 %v683_v40, %v679_v39 }
 0x404   : > { %694 = vrot.lane.b32.xlu1 %v685_v41, %s1561_s24  ;;  %s935_s24 = sshll.u32 %s494_s15, 4  ;;  %s1503_s24 = int_to_ptr.vmem [resolvable:$true] %s935_s24 }
 0x405   : > { %s1230_s25 = scalar_lea.vmem %s1503_s24, 128  ;;  %p1237_p0 = scmp.lt.s32.totalorder %s1503_s24, %s1235_s12 }
 0x406   : > { %p1231_p11 = scmp.ne.s32.totalorder %s1503_s24, %s1230_s25 }
 0x408   : > { %p1232_p12 = pnand %p1231_p11, %p1398_p5 }
 0x40a   : > { %p1233_p13 = pneg %p1232_p12 }
 0x476   : > { %v695_v42 = vpop.permute.xlu1 %694 }
 0x477   : > { %v697_v43 = vpack.c.bf16 %v695_v42, %v685_v41 }
 0x479   : > { %1158 = vmatmul.mubr.msk.bf16.vlgmr.msra.gmra.mrb[4].mxu0 %vm598_vm3, %v697_v43 }
 0x47a   : > { %1171 = vmatprep.mubr.msk.bf16.mxu0 %vm1295_vm0, %v1294_v0  ;;  %1168 = vmatpush3.bf16.msra.mxu0 %v1224_v11 }
 0x47b   : > { %1169 = vmatprep.subr.bf16.mxu0 %v1294_v0 }
 0x47e   : > { %1170 = vmatpush3.bf16.msra.mxu0 %v1225_v22 }
 0x54c   : > { %v751_v44 = vpop.f32.mrb[4].mxu0 }
 0x54d   : > { %v1159_v45 = vpop.f32.mrb[5].mxu0 }
 0x54e   : > { %v754_v46 = vpop.f32.mrb[6].mxu0 }
 0x54f   : > { %759 = vrot.lane.b32.xlu1 %v754_v46, %s1568_s0  ;;  %v1160_v47 = vpop.f32.mrb[7].mxu0  ;;  %s1508_s0 = scalar_lea.hbm %s1559_s11, %s1124_s13 }
 0x5c1   : > { %v760_v48 = vpop.permute.xlu1 %759 }
 0x5c2   : > { %v762_v49 = vsel %vm598_vm3, %v751_v44, %v760_v48 }
 0x5c3   : > { %v763_v50 = vpack.c.bf16 %v762_v49, %v762_v49 }
 0x5c5   : > { %v772_v51 = vsel %vm549_vm1, %v763_v50, 0 }
 0x5c6   : > { %1162 = vmatpush3.bf16.msra.mxu1 %v772_v51 }
 0x5c9   : > { %1164 = vmatmul.mubr.msk.bf16.vlgmr.msra.gmra.mrb[4].mxu1 %vm545_vm2, %v1436_v12  ;;  %v686_v12 = vsel %vm657_vm4, %v685_v41, inf }
 0x5ca   : > { %v687_v13 = vrot.slane %v686_v12, 4 }
 0x5cc   : > { %v688_v15 = vmin.f32 %v686_v12, %v687_v13 }
 0x5ce   : > { %v689_v19 = vrot.slane %v688_v15, 2 }
 0x5d0   : > { %v690_v24 = vmin.f32 %v688_v15, %v689_v19 }
 0x5d2   : > { %v691_v0 = vrot.slane %v690_v24, 1 }
 0x5d4   : > { %v692_v28 = vmin.f32 %v690_v24, %v691_v0 }
 0x69c   : > { %v808_v53 = vpop.f32.mrb[4].mxu1 }
 0x69d   : > { %v809_v54 = vadd.f32 %v1118_v52, %v808_v53  ;;  %v1165_v55 = vpop.f32.mrb[5].mxu1 }
 0x69e   : > { %v811_v56 = vpop.f32.mrb[6].mxu1 }
 0x69f   : > { %v814_v57 = vmax.f32 %v809_v54, 0.0  ;;  %v1166_v58 = vpop.f32.mrb[7].mxu1 }
 0x6a1   : > { %v817_v59 = vsel %vm657_vm4, %v814_v57, 0.0 }
 0x6a2   : > { %818 = vadd.xlane.f32.xlu1 %v817_v59 }
 0x72f   : > { %v819_v60 = vpop.xlane.xlu1 %818 }
 0x730   : > { %v820_v61 = vmul.f32 0.015625, %v819_v60 }
 0x732   : > { %v821_v62 = vsub.f32 %v814_v57, %v820_v61 }
 0x734   : > { %v822_v63 = vmul.f32 %v821_v62, %v821_v62 }
 0x736   : > { %v823_v1 = vsel %vm657_vm4, %v822_v63, 0.0 }
 0x737   : > { %824 = vadd.xlane.f32.xlu0 %v823_v1 }
 0x7c4   : > { %v825_v2 = vpop.xlane.xlu0 %824 }
 0x7c5   : > { %v826_v3 = vmul.f32 0.015625, %v825_v2 }
 0x7c7   : > { %v827_v4 = vadd.f32 1e-05, %v826_v3 }
 0x7c9   : > { %1228 = vrsqrt.f32 %v827_v4 }
 0x7d3   : > { %v1229_v6 = vpop.eup %1228 }
 0x7d4   : > { %v829_v7 = vmul.f32 %v1229_v6, %v815_v5 }
 0x7d6   : > { %834 = vperm.xlu0 %1220, %v829_v7   ;;  %v830_v9 = vmul.f32 %v829_v7, %v820_v61 }
 0x7d8   : > { %v831_v10 = vsub.f32 %v816_v8, %v830_v9 }
 0x7da   : > { %840 = vperm.xlu1 %1219, %v831_v10  }
 0x855   : > { %v835_v14 = vpop.permute.xlu0 %834 }
 0x856   : > { %v837_v16 = vmul.f32 %v835_v14, %v814_v57 }
 0x859   : > { %v841_v17 = vpop.permute.xlu1 %840 }
 0x85a   : > { %v843_v18 = vadd.f32 %v841_v17, %v837_v16 }
 0x85c   : > { %v844_v20 = vsel %vm657_vm4, %v843_v18, inf }
 0x85d   : > { %v845_v21 = vrot.slane %v844_v20, 4 }
 0x85f   : > { %v846_v23 = vmin.f32 %v844_v20, %v845_v21 }
 0x861   : > { %v847_v25 = vrot.slane %v846_v23, 2 }
 0x863   : > { %v848_v26 = vmin.f32 %v846_v23, %v847_v25 }
 0x865   : > { %v849_v27 = vrot.slane %v848_v26, 1 }
 0x867   : > { %v850_v29 = vmin.f32 %v848_v26, %v849_v27 }
 0x869   : > { %v851_v30 = vadd.f32 %v850_v29, %v692_v28 }
 0x86b   : > { %853 = vrot.lane.b32.xlu0 %v851_v30, %s1569_s29  ;;  %s1236_s29 = scalar_lea.vmem %s1235_s12, 256 }
 0x86c   : > { %p1238_p1 = scmp.lt.s32.totalorder %s1236_s29, %s1230_s25 }
 0x86e   : > { %p1239_p2 = por %p1238_p1, %p1237_p0 }
 0x870   : > { %p1240_p3 = pnand %p1239_p2, %p1233_p13 }
 0x8dd   : > { %v854_v31 = vpop.permute.xlu0 %853 }
 0x8de   : > { %v857_v32 = vsel %vm856_vm5, %v851_v30, %v854_v31 }
 0x8df   : > { %v859_v33 = vsel %vm858_vm6, %v857_v32, 0.0 }
 0x8e0   : > { %v860_v34 = vpack.c.bf16 %v859_v33, %v859_v33 }
 0x8e2   : > { %1172 = vmatmul.mubr.msk.bf16.vlgmr.msra.gmra.mrb[8].mxu0 %vm598_vm3, %v860_v34 }
 0x9b5   : > { %v914_v35 = vpop.f32.mrb[8].mxu0 }
 0x9b6   : > { %920 = vst [vmem:[%s494_s15] sm:$0xff] %v914_v35  ;;  %v1173_v36 = vpop.f32.mrb[9].mxu0 }
 0x9b7   : > { %v917_v37 = vpop.f32.mrb[10].mxu0 }
 0x9b8   : > { %1243 = shalt.err (!%p1240_p3)
}
 0x9b9   : > { %s1244_s1 = scalar_lea.hbm %s1508_s0, 128  ;;  %s1248_s13 = scalar_lea.hbm %s1559_s11, 256 }
 0x9ba   : > { %p1245_p4 = scmp.ne.s32.totalorder %s1508_s0, %s1244_s1  ;;  %p1249_p9 = scmp.lt.u32.totalorder %s1508_s0, %s1559_s11 }
 0x9bb   : > { %p1250_p10 = scmp.lt.u32.totalorder %s1248_s13, %s1244_s1  ;;  %p1252_p12 = scmp.lt.u32.totalorder %s1244_s1, %s1508_s0 }
 0x9bc   : > { %p1246_p7 = pnand %p1245_p4, %p1398_p5 }
 0x9bd   : > { %p1251_p11 = por %p1250_p10, %p1249_p9 }
 0x9be   : > { %p1247_p8 = pneg %p1246_p7 }
 0x9bf   : > { %p1253_p13 = por %p1252_p12, %p1251_p11 }
 0x9c1   : > { %p1254_p0 = pnand %p1253_p13, %p1247_p8 }
 0x9c3   : > { %1257 = shalt.err (!%p1254_p0)
}
 0x9c4   : > { %1175 = dma.vmem_to_hbm [thread:$0]  (%p1398_p5), %s1503_s24, 128, %s1508_s0, %s922_s22   ;;  %v1174_v38 = vpop.f32.mrb[11].mxu0 }
 0x9c5 PF: > { %p1181_p1 = scmp.ge.s32.totalorder %s1292_s20, 2  ;;  %s947_s25 = sand.u32 1, %s1280_s17  }
 0x9c6   : > { %s948_s21 = scalar_lea.sflag [#allocation3], %s947_s25 }
 0x9c7   : > { %p1178_p2 = pnand %p1181_p1, %p1402_p6 }
 0x9c9   : > { %1275 = dma.done.wait (!%p1178_p2), %s948_s21, 128  }
 0x9ca   : > { %1277 = vsyncadd (!%p1178_p2), %s948_s21, 4294967168  ;;  %p21_p3 = scmp.ge.s32.totalorder %s1385_s23, 4   ;;  %s1570_s17 = smov %s1284_s18 }
 0x9cb   : > { %s1571_s18 = smov %s1288_s19  ;;  %s1572_s19 = smov %s1396_s26 }
 0x9cc   : > { %s1573_s20 = smov %s1385_s23  ;;  %23 = sbr.rel (!%p21_p3) target bundleno = 6 (0x6), region = 126 }
 0x9d3   :  { %953 = vsyncpa [#allocation3], 1 }
 0x9d4   :  { %955 = vsyncpa [#allocation3 + $0x1], 1 }

</bundles_post_ra>
